<compile_context>
chip_gen: v6e
topology: v6e:2x2x1
jax: 0.10.0
libtpu: 0.0.40
codegen_flags: <defaults>
</compile_context>

<pallas_src>
import functools

import jax
import jax.numpy as jnp
from jax.experimental import pallas as pl
from jax.experimental.pallas import tpu as pltpu

EOS_IDX = 3  # DeepCAD convention: [Line, Arc, Circle, EOS, SOL, Ext]

# Deterministic, in-script CMD_ARGS_MASK buffer: [n_commands, n_args]
CMD_ARGS_MASK = jnp.array(
    [
        [1, 1, 0, 0, 0, 0, 0, 0],  # Line
        [1, 1, 1, 1, 0, 0, 0, 0],  # Arc
        [1, 1, 1, 0, 0, 0, 0, 0],  # Circle
        [0, 0, 0, 0, 0, 0, 0, 0],  # EOS
        [0, 0, 0, 0, 0, 0, 0, 0],  # SOL
        [0, 0, 0, 0, 1, 1, 1, 1],  # Ext
    ],
    dtype=jnp.float32,
)

_CLASS_PAD = -1.0e30  # class-dim padding value; never affects max / logsumexp


def _round_up(x, m):
    return ((x + m - 1) // m) * m


@functools.lru_cache(maxsize=1)
def _tpu_tuning():
    """(num_chunks, use_bf16_exp) derived from the local TPU generation."""
    try:
        kind = jax.devices()[0].device_kind.lower()
    except Exception:  # pragma: no cover - defensive
        kind = ""
    # v7x has 2 TensorCores per chip -> shard the leading "parallel" grid axis.
    num_chunks = 2 if "v7" in kind else 1
    # bf16 EUP exp exists on v6e/v7x; keep the exact f32 path elsewhere (v5e
    # has no bf16 EUP/VPU).
    use_bf16_exp = ("v6" in kind) or ("v7" in kind)
    return num_chunks, use_bf16_exp


def _masked_ce_kernel(logits_ref, tm_ref, sum_ref, cnt_ref,
                      acc_sum_ref, acc_cnt_ref, *, use_bf16_exp):
    """Per-chunk masked cross-entropy partial sum / partial count.

    Grid is (P, steps): axis 0 ("parallel") splits the row range into P chunks
    (P=2 only on 2-TC v7x), axis 1 ("arbitrary") walks the row tiles of one
    chunk.  Inputs are class-major: logits (C_pad, TR) with rows on the lane
    axis, tm (2, TR) int32 with target ids in row 0 and the 0/1 mask in row 1.
    Per-row ce*m and m accumulate into lane-dense (1, TR) scratch; the scalar
    reduce + lane-dense (8,128) store happens only on the last step.
    """
    j = pl.program_id(1)
    n_j = pl.num_programs(1)

    @pl.when(j == 0)
    def _():
        acc_sum_ref[...] = jnp.zeros_like(acc_sum_ref)
        acc_cnt_ref[...] = jnp.zeros_like(acc_cnt_ref)

    logits = logits_ref[...]                      # (C_pad, TR) f32
    tm = tm_ref[...]                              # (2, TR) i32
    tgt = tm[0:1, :]                              # (1, TR) i32
    m = tm[1:2, :].astype(jnp.float32)            # (1, TR) f32 (0/1)

    c_pad, tr = logits.shape

    mx = jnp.max(logits, axis=0, keepdims=True)   # (1, TR)
    shifted = logits - mx
    if use_bf16_exp:
        # bf16 exp rides the EUP at double rate on v6e/v7x; sum/log stay f32.
        ex = jnp.exp(shifted.astype(jnp.bfloat16)).astype(jnp.float32)
    else:
        ex = jnp.exp(shifted)
    lse = jnp.log(jnp.sum(ex, axis=0, keepdims=True)) + mx      # (1, TR)

    cls = jax.lax.broadcasted_iota(jnp.int32, (c_pad, tr), 0)
    tgt_logit = jnp.sum(jnp.where(cls == tgt, logits, 0.0),
                        axis=0, keepdims=True)                  # (1, TR)
    ce = lse - tgt_logit                                        # (1, TR)

    acc_sum_ref[...] = acc_sum_ref[...] + ce * m
    acc_cnt_ref[...] = acc_cnt_ref[...] + m

    @pl.when(j == n_j - 1)
    def _():
        s = jnp.sum(acc_sum_ref[...])
        n = jnp.sum(acc_cnt_ref[...])
        sum_ref[...] = jnp.full(sum_ref.shape, s, dtype=sum_ref.dtype)
        cnt_ref[...] = jnp.full(cnt_ref.shape, n, dtype=cnt_ref.dtype)


def masked_cross_entropy_mean(logits, targets, mask, weight, *,
                              tile_rows=8192, num_chunks=1, use_bf16_exp=False):
    """weight * mean over rows where mask!=0 of CE(logits_row, target_row).

    Matches torch.nn.functional.cross_entropy(reduction='mean') over the
    mask-selected rows (NaN if the mask is all zeros, same as torch).
    NOTE: out-of-range targets silently yield target_logit = 0 (torch would
    raise); callers must guarantee 0 <= target < num_classes.
    """
    r, c = logits.shape
    c_pad = _round_up(c, 8)
    tr = min(int(tile_rows), _round_up(max(r, 1), 128))   # lane-axis tile
    p = max(int(num_chunks), 1)
    r_pad = _round_up(r, p * tr)
    steps = r_pad // (p * tr)

    # Class-major, lane-dense layout: rows on the 128-lane axis.  Class-dim
    # padding uses a very negative value so it never affects max / logsumexp;
    # row-dim padding carries mask == 0 so it contributes nothing.
    logits_t = jnp.full((c_pad, r_pad), _CLASS_PAD, dtype=jnp.float32)
    logits_t = logits_t.at[:c, :r].set(logits.astype(jnp.float32).T)

    tm = jnp.zeros((2, r_pad), dtype=jnp.int32)
    tm = tm.at[0, :r].set(targets.astype(jnp.int32).reshape(r))
    tm = tm.at[1, :r].set((mask.reshape(r) != 0).astype(jnp.int32))

    kernel = functools.partial(_masked_ce_kernel, use_bf16_exp=use_bf16_exp)

    def col_map(pi, j):
        return (0, pi * steps + j)

    sum_out, cnt_out = pl.pallas_call(
        kernel,
        out_shape=(
            jax.ShapeDtypeStruct((p * 8, 128), jnp.float32),
            jax.ShapeDtypeStruct((p * 8, 128), jnp.float32),
        ),
        grid_spec=pltpu.PrefetchScalarGridSpec(
            num_scalar_prefetch=0,
            grid=(p, steps),
            in_specs=[
                pl.BlockSpec((c_pad, tr), col_map),
                pl.BlockSpec((2, tr), col_map),
            ],
            out_specs=(
                pl.BlockSpec((8, 128), lambda pi, j: (pi, 0)),
                pl.BlockSpec((8, 128), lambda pi, j: (pi, 0)),
            ),
            scratch_shapes=[
                pltpu.VMEM((1, tr), jnp.float32),   # per-row ce*m accumulator
                pltpu.VMEM((1, tr), jnp.float32),   # per-row mask accumulator
            ],
        ),
        compiler_params=pltpu.CompilerParams(
            dimension_semantics=("parallel", "arbitrary"),
        ),
    )(logits_t, tm)

    partial_sums = sum_out.reshape(p, 8, 128)[:, 0, 0]
    partial_cnts = cnt_out.reshape(p, 8, 128)[:, 0, 0]
    return weight * (jnp.sum(partial_sums) / jnp.sum(partial_cnts))


def _build_masks(gt_command, cmd_args_mask):
    """visibility / padding / per-arg masks exactly as the reference builds them."""
    n, s = gt_command.shape
    is_eos = (gt_command == EOS_IDX)
    # _get_visibility_mask(seq_dim=-1): [N] bool
    visibility = jnp.sum(is_eos, axis=-1) < (s - 1)
    # _get_padding_mask(seq_dim=-1, extended=True): [N, S] float
    padding = (jnp.cumsum(is_eos.astype(jnp.int32), axis=-1) == 0).astype(jnp.float32)
    # NOTE: the reference's `extended` in-place branch operates on a `.clone()`,
    # so it never modifies padding_mask; faithfully reproduced as a no-op.
    padding = padding * visibility[:, None].astype(jnp.float32)
    # mask = cmd_args_mask[gt_command]: [N, S, n_args]
    arg_mask = cmd_args_mask[gt_command]
    return padding, arg_mask


@functools.partial(jax.jit, static_argnames=("cmd_weight", "args_weight"))
def cad_loss(command_logits, args_logits, gt_command, gt_param,
             cmd_args_mask, cmd_weight=1.0, args_weight=2.0):
    n, s, n_commands = command_logits.shape
    args_dim = args_logits.shape[-1]

    num_chunks, use_bf16_exp = _tpu_tuning()
    padding, arg_mask = _build_masks(gt_command, cmd_args_mask)

    loss_cmd = masked_cross_entropy_mean(
        command_logits.reshape(-1, n_commands),
        gt_command.reshape(-1),
        padding.reshape(-1),
        cmd_weight,
        num_chunks=num_chunks,
        use_bf16_exp=use_bf16_exp,
    )
    loss_args = masked_cross_entropy_mean(
        args_logits.reshape(-1, args_dim),
        gt_param.reshape(-1) + 1,
        arg_mask.reshape(-1),
        args_weight,
        num_chunks=num_chunks,
        use_bf16_exp=use_bf16_exp,
    )
    # TODO(synk): text branch skipped (use_text=False); reference condition
    # `not text_logits` is not well-defined for tensors anyway.
    return {"loss_cmd": loss_cmd, "loss_args": loss_args}


def _reference_cad_loss(command_logits, args_logits, gt_command, gt_param,
                        cmd_args_mask, cmd_weight, args_weight):
    """Pure-JAX reference (no Pallas) for a correctness cross-check."""
    def masked_ce(logits, targets, mask, weight):
        logits = logits.astype(jnp.float32)
        lse = jax.scipy.special.logsumexp(logits, axis=-1)
        tgt = jnp.take_along_axis(
            logits, targets.astype(jnp.int32)[:, None], axis=-1)[:, 0]
        ce = lse - tgt
        m = (mask != 0).astype(jnp.float32)
        return weight * jnp.sum(ce * m) / jnp.sum(m)

    n, s, n_commands = command_logits.shape
    args_dim = args_logits.shape[-1]
    padding, arg_mask = _build_masks(gt_command, cmd_args_mask)
    loss_cmd = masked_ce(command_logits.reshape(-1, n_commands),
                         gt_command.reshape(-1), padding.reshape(-1), cmd_weight)
    loss_args = masked_ce(args_logits.reshape(-1, args_dim),
                          gt_param.reshape(-1) + 1, arg_mask.reshape(-1),
                          args_weight)
    return {"loss_cmd": loss_cmd, "loss_args": loss_args}


if __name__ == "__main__":
    key = jax.random.PRNGKey(0)
    N, S = 2, 16
    n_commands, n_args = 6, 8
    args_dim = 32 + 1  # config.cad_params.args_dim + 1

    k1, k2, k3, k4 = jax.random.split(key, 4)
    command_logits = jax.random.normal(k1, (N, S, n_commands), jnp.float32)
    args_logits = jax.random.normal(k2, (N, S, n_args, args_dim), jnp.float32)
    gt_command = jax.random.randint(k3, (N, S), 0, n_commands, dtype=jnp.int32)
    # make sequences well-formed: SOL, a Line, ..., trailing EOS tokens
    gt_command = gt_command.at[:, 0].set(4)        # SOL
    gt_command = gt_command.at[:, 1].set(0)        # Line
    gt_command = gt_command.at[:, -4:].set(EOS_IDX)
    gt_param = jax.random.randint(k4, (N, S, n_args), -1, args_dim - 1,
                                  dtype=jnp.int32)

    res = cad_loss(command_logits, args_logits, gt_command, gt_param,
                   CMD_ARGS_MASK, cmd_weight=1.0, args_weight=2.0)
    jax.block_until_ready(res)
    assert jnp.isfinite(res["loss_cmd"]) and jnp.isfinite(res["loss_args"])

    ref = _reference_cad_loss(command_logits, args_logits, gt_command, gt_param,
                              CMD_ARGS_MASK, 1.0, 2.0)
    jax.block_until_ready(ref)
    # loose tolerance covers the optional bf16-exp fast path on v6e/v7x
    assert jnp.allclose(res["loss_cmd"], ref["loss_cmd"], rtol=1e-1, atol=1e-2)
    assert jnp.allclose(res["loss_args"], ref["loss_args"], rtol=1e-1, atol=1e-2)

    print("KERNEL_OK")
</pallas_src>

<mosaic_0001>
module attributes {stable_mosaic.version = 11 : i64} {
  func.func @_masked_ce_kernel(%arg0: i32, %arg1: i32, %arg2: memref<40x256xf32, #tpu.memory_space<vmem>>, %arg3: memref<2x256xi32, #tpu.memory_space<vmem>>, %arg4: memref<8x128xf32, #tpu.memory_space<vmem>>, %arg5: memref<8x128xf32, #tpu.memory_space<vmem>>, %arg6: memref<1x256xf32, #tpu.memory_space<vmem>>, %arg7: memref<1x256xf32, #tpu.memory_space<vmem>>) attributes {dimension_semantics = [#tpu.dimension_semantics<parallel>, #tpu.dimension_semantics<arbitrary>], iteration_bounds = array<i64: 1, 1>, scalar_prefetch = 0 : i64, scratch_operands = 2 : i64, tpu.core_type = #tpu.core_type<tc>, window_params = [{transform_indices = @transform_0, window_bounds = array<i64: 40, 256>}, {transform_indices = @transform_1, window_bounds = array<i64: 2, 256>}, {transform_indices = @transform_2, window_bounds = array<i64: 8, 128>}, {transform_indices = @transform_3, window_bounds = array<i64: 8, 128>}]} {
    %c0_i32 = arith.constant 0 : i32
    %0 = arith.cmpi eq, %arg1, %c0_i32 : i32
    %1 = arith.extui %0 : i1 to i32
    %c0_i32_0 = arith.constant 0 : i32
    %2 = arith.cmpi ne, %1, %c0_i32_0 : i32
    scf.if %2 {
      %cst_17 = arith.constant 0.000000e+00 : f32
      %35 = vector.broadcast %cst_17 : f32 to vector<1x256xf32>
      %c0_18 = arith.constant 0 : index
      %c0_19 = arith.constant 0 : index
      %36 = vector.load %arg6[%c0_18, %c0_19] : memref<1x256xf32, #tpu.memory_space<vmem>>, vector<1x256xf32>
      tpu.vector_store %arg6[%c0_18, %c0_19], %35 {strides = array<i32>} : memref<1x256xf32, #tpu.memory_space<vmem>>, vector<1x256xf32>,
      %cst_20 = arith.constant 0.000000e+00 : f32
      %37 = vector.broadcast %cst_20 : f32 to vector<1x256xf32>
      %c0_21 = arith.constant 0 : index
      %c0_22 = arith.constant 0 : index
      %38 = vector.load %arg7[%c0_21, %c0_22] : memref<1x256xf32, #tpu.memory_space<vmem>>, vector<1x256xf32>
      tpu.vector_store %arg7[%c0_21, %c0_22], %37 {strides = array<i32>} : memref<1x256xf32, #tpu.memory_space<vmem>>, vector<1x256xf32>,
    } else {
    }
    %c0 = arith.constant 0 : index
    %c0_1 = arith.constant 0 : index
    %3 = vector.load %arg2[%c0, %c0_1] : memref<40x256xf32, #tpu.memory_space<vmem>>, vector<40x256xf32>
    %c0_2 = arith.constant 0 : index
    %c0_3 = arith.constant 0 : index
    %4 = vector.load %arg3[%c0_2, %c0_3] : memref<2x256xi32, #tpu.memory_space<vmem>>, vector<2x256xi32>
    %5 = vector.extract_strided_slice %4 {offsets = [0, 0], sizes = [1, 256], strides = [1, 1]} : vector<2x256xi32> to vector<1x256xi32>
    %6 = vector.extract_strided_slice %4 {offsets = [1, 0], sizes = [1, 256], strides = [1, 1]} : vector<2x256xi32> to vector<1x256xi32>
    %7 = arith.sitofp %6 : vector<1x256xi32> to vector<1x256xf32>
    %cst = arith.constant dense<0xFF800000> : vector<256xf32>
    %8 = vector.multi_reduction <maximumf>, %3, %cst [0] : vector<40x256xf32> to vector<256xf32>
    %9 = vector.shape_cast %8 : vector<256xf32> to vector<1x256xf32>
    %10 = vector.broadcast %9 : vector<1x256xf32> to vector<40x256xf32>
    %11 = arith.subf %3, %10 : vector<40x256xf32>
    %12 = math.exp %11 : vector<40x256xf32>
    %cst_4 = arith.constant dense<0.000000e+00> : vector<256xf32>
    %13 = vector.multi_reduction <add>, %12, %cst_4 [0] : vector<40x256xf32> to vector<256xf32>
    %14 = vector.shape_cast %13 : vector<256xf32> to vector<1x256xf32>
    %15 = math.log %14 : vector<1x256xf32>
    %16 = arith.addf %15, %9 : vector<1x256xf32>
    %17 = tpu.iota {dimensions = array<i32: 0>} : vector<40x256xi32>
    %18 = vector.broadcast %5 : vector<1x256xi32> to vector<40x256xi32>
    %19 = arith.cmpi eq, %17, %18 : vector<40x256xi32>
    %cst_5 = arith.constant 0.000000e+00 : f32
    %20 = vector.broadcast %cst_5 : f32 to vector<40x256xf32>
    %21 = arith.select %19, %3, %20 : vector<40x256xi1>, vector<40x256xf32>
    %cst_6 = arith.constant dense<0.000000e+00> : vector<256xf32>
    %22 = vector.multi_reduction <add>, %21, %cst_6 [0] : vector<40x256xf32> to vector<256xf32>
    %23 = vector.shape_cast %22 : vector<256xf32> to vector<1x256xf32>
    %24 = arith.subf %16, %23 : vector<1x256xf32>
    %c0_7 = arith.constant 0 : index
    %c0_8 = arith.constant 0 : index
    %25 = vector.load %arg6[%c0_7, %c0_8] : memref<1x256xf32, #tpu.memory_space<vmem>>, vector<1x256xf32>
    %26 = arith.mulf %24, %7 : vector<1x256xf32>
    %27 = arith.addf %25, %26 : vector<1x256xf32>
    %c0_9 = arith.constant 0 : index
    %c0_10 = arith.constant 0 : index
    %28 = vector.load %arg6[%c0_9, %c0_10] : memref<1x256xf32, #tpu.memory_space<vmem>>, vector<1x256xf32>
    tpu.vector_store %arg6[%c0_9, %c0_10], %27 {strides = array<i32>} : memref<1x256xf32, #tpu.memory_space<vmem>>, vector<1x256xf32>,
    %c0_11 = arith.constant 0 : index
    %c0_12 = arith.constant 0 : index
    %29 = vector.load %arg7[%c0_11, %c0_12] : memref<1x256xf32, #tpu.memory_space<vmem>>, vector<1x256xf32>
    %30 = arith.addf %29, %7 : vector<1x256xf32>
    %c0_13 = arith.constant 0 : index
    %c0_14 = arith.constant 0 : index
    %31 = vector.load %arg7[%c0_13, %c0_14] : memref<1x256xf32, #tpu.memory_space<vmem>>, vector<1x256xf32>
    tpu.vector_store %arg7[%c0_13, %c0_14], %30 {strides = array<i32>} : memref<1x256xf32, #tpu.memory_space<vmem>>, vector<1x256xf32>,
    %c0_i32_15 = arith.constant 0 : i32
    %32 = arith.cmpi eq, %arg1, %c0_i32_15 : i32
    %33 = arith.extui %32 : i1 to i32
    %c0_i32_16 = arith.constant 0 : i32
    %34 = arith.cmpi ne, %33, %c0_i32_16 : i32
    scf.if %34 {
      %c0_17 = arith.constant 0 : index
      %c0_18 = arith.constant 0 : index
      %35 = vector.load %arg6[%c0_17, %c0_18] : memref<1x256xf32, #tpu.memory_space<vmem>>, vector<1x256xf32>
      %36 = vector.shape_cast %35 : vector<1x256xf32> to vector<1x1x256xf32>
      %cst_19 = arith.constant dense<0.000000e+00> : vector<1xf32>
      %37 = vector.multi_reduction <add>, %36, %cst_19 [1, 2] : vector<1x1x256xf32> to vector<1xf32>
      %38 = vector.shape_cast %37 : vector<1xf32> to vector<1x1x1xf32>
      %39 = vector.extract %38[0, 0, 0] : f32 from vector<1x1x1xf32>
      %c0_20 = arith.constant 0 : index
      %c0_21 = arith.constant 0 : index
      %40 = vector.load %arg7[%c0_20, %c0_21] : memref<1x256xf32, #tpu.memory_space<vmem>>, vector<1x256xf32>
      %41 = vector.shape_cast %40 : vector<1x256xf32> to vector<1x1x256xf32>
      %cst_22 = arith.constant dense<0.000000e+00> : vector<1xf32>
      %42 = vector.multi_reduction <add>, %41, %cst_22 [1, 2] : vector<1x1x256xf32> to vector<1xf32>
      %43 = vector.shape_cast %42 : vector<1xf32> to vector<1x1x1xf32>
      %44 = vector.extract %43[0, 0, 0] : f32 from vector<1x1x1xf32>
      %45 = vector.broadcast %39 : f32 to vector<8x128xf32>
      %c0_23 = arith.constant 0 : index
      %c0_24 = arith.constant 0 : index
      %46 = vector.load %arg4[%c0_23, %c0_24] : memref<8x128xf32, #tpu.memory_space<vmem>>, vector<8x128xf32>
      tpu.vector_store %arg4[%c0_23, %c0_24], %45 {strides = array<i32>} : memref<8x128xf32, #tpu.memory_space<vmem>>, vector<8x128xf32>,
      %47 = vector.broadcast %44 : f32 to vector<8x128xf32>
      %c0_25 = arith.constant 0 : index
      %c0_26 = arith.constant 0 : index
      %48 = vector.load %arg5[%c0_25, %c0_26] : memref<8x128xf32, #tpu.memory_space<vmem>>, vector<8x128xf32>
      tpu.vector_store %arg5[%c0_25, %c0_26], %47 {strides = array<i32>} : memref<8x128xf32, #tpu.memory_space<vmem>>, vector<8x128xf32>,
    } else {
    }
    return
  }
  func.func @transform_0(%arg0: i32, %arg1: i32) -> (i32, i32) {
    %c1_i32 = arith.constant 1 : i32
    %0 = arith.muli %arg0, %c1_i32 : i32
    %1 = arith.addi %0, %arg1 : i32
    %c0_i32 = arith.constant 0 : i32
    %c0_i32_0 = arith.constant 0 : i32
    return %c0_i32, %1 : i32, i32
  }
  func.func @transform_1(%arg0: i32, %arg1: i32) -> (i32, i32) {
    %c1_i32 = arith.constant 1 : i32
    %0 = arith.muli %arg0, %c1_i32 : i32
    %1 = arith.addi %0, %arg1 : i32
    %c0_i32 = arith.constant 0 : i32
    %c0_i32_0 = arith.constant 0 : i32
    return %c0_i32, %1 : i32, i32
  }
  func.func @transform_2(%arg0: i32, %arg1: i32) -> (i32, i32) {
    %c0_i32 = arith.constant 0 : i32
    %c0_i32_0 = arith.constant 0 : i32
    return %arg0, %c0_i32 : i32, i32
  }
  func.func @transform_3(%arg0: i32, %arg1: i32) -> (i32, i32) {
    %c0_i32 = arith.constant 0 : i32
    %c0_i32_0 = arith.constant 0 : i32
    return %arg0, %c0_i32 : i32, i32
  }
}

module attributes {stable_mosaic.version = 11 : i64} {
  func.func @_masked_ce_kernel(%arg0: i32, %arg1: i32, %arg2: memref<8x128xf32, #tpu.memory_space<vmem>>, %arg3: memref<2x128xi32, #tpu.memory_space<vmem>>, %arg4: memref<8x128xf32, #tpu.memory_space<vmem>>, %arg5: memref<8x128xf32, #tpu.memory_space<vmem>>, %arg6: memref<1x128xf32, #tpu.memory_space<vmem>>, %arg7: memref<1x128xf32, #tpu.memory_space<vmem>>) attributes {dimension_semantics = [#tpu.dimension_semantics<parallel>, #tpu.dimension_semantics<arbitrary>], iteration_bounds = array<i64: 1, 1>, scalar_prefetch = 0 : i64, scratch_operands = 2 : i64, tpu.core_type = #tpu.core_type<tc>, window_params = [{transform_indices = @transform_0, window_bounds = array<i64: 8, 128>}, {transform_indices = @transform_1, window_bounds = array<i64: 2, 128>}, {transform_indices = @transform_2, window_bounds = array<i64: 8, 128>}, {transform_indices = @transform_3, window_bounds = array<i64: 8, 128>}]} {
    %c0_i32 = arith.constant 0 : i32
    %0 = arith.cmpi eq, %arg1, %c0_i32 : i32
    %1 = arith.extui %0 : i1 to i32
    %c0_i32_0 = arith.constant 0 : i32
    %2 = arith.cmpi ne, %1, %c0_i32_0 : i32
    scf.if %2 {
      %cst_17 = arith.constant 0.000000e+00 : f32
      %35 = vector.broadcast %cst_17 : f32 to vector<1x128xf32>
      %c0_18 = arith.constant 0 : index
      %c0_19 = arith.constant 0 : index
      %36 = vector.load %arg6[%c0_18, %c0_19] : memref<1x128xf32, #tpu.memory_space<vmem>>, vector<1x128xf32>
      tpu.vector_store %arg6[%c0_18, %c0_19], %35 {strides = array<i32>} : memref<1x128xf32, #tpu.memory_space<vmem>>, vector<1x128xf32>,
      %cst_20 = arith.constant 0.000000e+00 : f32
      %37 = vector.broadcast %cst_20 : f32 to vector<1x128xf32>
      %c0_21 = arith.constant 0 : index
      %c0_22 = arith.constant 0 : index
      %38 = vector.load %arg7[%c0_21, %c0_22] : memref<1x128xf32, #tpu.memory_space<vmem>>, vector<1x128xf32>
      tpu.vector_store %arg7[%c0_21, %c0_22], %37 {strides = array<i32>} : memref<1x128xf32, #tpu.memory_space<vmem>>, vector<1x128xf32>,
    } else {
    }
    %c0 = arith.constant 0 : index
    %c0_1 = arith.constant 0 : index
    %3 = vector.load %arg2[%c0, %c0_1] : memref<8x128xf32, #tpu.memory_space<vmem>>, vector<8x128xf32>
    %c0_2 = arith.constant 0 : index
    %c0_3 = arith.constant 0 : index
    %4 = vector.load %arg3[%c0_2, %c0_3] : memref<2x128xi32, #tpu.memory_space<vmem>>, vector<2x128xi32>
    %5 = vector.extract_strided_slice %4 {offsets = [0, 0], sizes = [1, 128], strides = [1, 1]} : vector<2x128xi32> to vector<1x128xi32>
    %6 = vector.extract_strided_slice %4 {offsets = [1, 0], sizes = [1, 128], strides = [1, 1]} : vector<2x128xi32> to vector<1x128xi32>
    %7 = arith.sitofp %6 : vector<1x128xi32> to vector<1x128xf32>
    %cst = arith.constant dense<0xFF800000> : vector<128xf32>
    %8 = vector.multi_reduction <maximumf>, %3, %cst [0] : vector<8x128xf32> to vector<128xf32>
    %9 = vector.shape_cast %8 : vector<128xf32> to vector<1x128xf32>
    %10 = vector.broadcast %9 : vector<1x128xf32> to vector<8x128xf32>
    %11 = arith.subf %3, %10 : vector<8x128xf32>
    %12 = math.exp %11 : vector<8x128xf32>
    %cst_4 = arith.constant dense<0.000000e+00> : vector<128xf32>
    %13 = vector.multi_reduction <add>, %12, %cst_4 [0] : vector<8x128xf32> to vector<128xf32>
    %14 = vector.shape_cast %13 : vector<128xf32> to vector<1x128xf32>
    %15 = math.log %14 : vector<1x128xf32>
    %16 = arith.addf %15, %9 : vector<1x128xf32>
    %17 = tpu.iota {dimensions = array<i32: 0>} : vector<8x128xi32>
    %18 = vector.broadcast %5 : vector<1x128xi32> to vector<8x128xi32>
    %19 = arith.cmpi eq, %17, %18 : vector<8x128xi32>
    %cst_5 = arith.constant 0.000000e+00 : f32
    %20 = vector.broadcast %cst_5 : f32 to vector<8x128xf32>
    %21 = arith.select %19, %3, %20 : vector<8x128xi1>, vector<8x128xf32>
    %cst_6 = arith.constant dense<0.000000e+00> : vector<128xf32>
    %22 = vector.multi_reduction <add>, %21, %cst_6 [0] : vector<8x128xf32> to vector<128xf32>
    %23 = vector.shape_cast %22 : vector<128xf32> to vector<1x128xf32>
    %24 = arith.subf %16, %23 : vector<1x128xf32>
    %c0_7 = arith.constant 0 : index
    %c0_8 = arith.constant 0 : index
    %25 = vector.load %arg6[%c0_7, %c0_8] : memref<1x128xf32, #tpu.memory_space<vmem>>, vector<1x128xf32>
    %26 = arith.mulf %24, %7 : vector<1x128xf32>
    %27 = arith.addf %25, %26 : vector<1x128xf32>
    %c0_9 = arith.constant 0 : index
    %c0_10 = arith.constant 0 : index
    %28 = vector.load %arg6[%c0_9, %c0_10] : memref<1x128xf32, #tpu.memory_space<vmem>>, vector<1x128xf32>
    tpu.vector_store %arg6[%c0_9, %c0_10], %27 {strides = array<i32>} : memref<1x128xf32, #tpu.memory_space<vmem>>, vector<1x128xf32>,
    %c0_11 = arith.constant 0 : index
    %c0_12 = arith.constant 0 : index
    %29 = vector.load %arg7[%c0_11, %c0_12] : memref<1x128xf32, #tpu.memory_space<vmem>>, vector<1x128xf32>
    %30 = arith.addf %29, %7 : vector<1x128xf32>
    %c0_13 = arith.constant 0 : index
    %c0_14 = arith.constant 0 : index
    %31 = vector.load %arg7[%c0_13, %c0_14] : memref<1x128xf32, #tpu.memory_space<vmem>>, vector<1x128xf32>
    tpu.vector_store %arg7[%c0_13, %c0_14], %30 {strides = array<i32>} : memref<1x128xf32, #tpu.memory_space<vmem>>, vector<1x128xf32>,
    %c0_i32_15 = arith.constant 0 : i32
    %32 = arith.cmpi eq, %arg1, %c0_i32_15 : i32
    %33 = arith.extui %32 : i1 to i32
    %c0_i32_16 = arith.constant 0 : i32
    %34 = arith.cmpi ne, %33, %c0_i32_16 : i32
    scf.if %34 {
      %c0_17 = arith.constant 0 : index
      %c0_18 = arith.constant 0 : index
      %35 = vector.load %arg6[%c0_17, %c0_18] : memref<1x128xf32, #tpu.memory_space<vmem>>, vector<1x128xf32>
      %36 = vector.shape_cast %35 : vector<1x128xf32> to vector<1x1x128xf32>
      %cst_19 = arith.constant dense<0.000000e+00> : vector<1xf32>
      %37 = vector.multi_reduction <add>, %36, %cst_19 [1, 2] : vector<1x1x128xf32> to vector<1xf32>
      %38 = vector.shape_cast %37 : vector<1xf32> to vector<1x1x1xf32>
      %39 = vector.extract %38[0, 0, 0] : f32 from vector<1x1x1xf32>
      %c0_20 = arith.constant 0 : index
      %c0_21 = arith.constant 0 : index
      %40 = vector.load %arg7[%c0_20, %c0_21] : memref<1x128xf32, #tpu.memory_space<vmem>>, vector<1x128xf32>
      %41 = vector.shape_cast %40 : vector<1x128xf32> to vector<1x1x128xf32>
      %cst_22 = arith.constant dense<0.000000e+00> : vector<1xf32>
      %42 = vector.multi_reduction <add>, %41, %cst_22 [1, 2] : vector<1x1x128xf32> to vector<1xf32>
      %43 = vector.shape_cast %42 : vector<1xf32> to vector<1x1x1xf32>
      %44 = vector.extract %43[0, 0, 0] : f32 from vector<1x1x1xf32>
      %45 = vector.broadcast %39 : f32 to vector<8x128xf32>
      %c0_23 = arith.constant 0 : index
      %c0_24 = arith.constant 0 : index
      %46 = vector.load %arg4[%c0_23, %c0_24] : memref<8x128xf32, #tpu.memory_space<vmem>>, vector<8x128xf32>
      tpu.vector_store %arg4[%c0_23, %c0_24], %45 {strides = array<i32>} : memref<8x128xf32, #tpu.memory_space<vmem>>, vector<8x128xf32>,
      %47 = vector.broadcast %44 : f32 to vector<8x128xf32>
      %c0_25 = arith.constant 0 : index
      %c0_26 = arith.constant 0 : index
      %48 = vector.load %arg5[%c0_25, %c0_26] : memref<8x128xf32, #tpu.memory_space<vmem>>, vector<8x128xf32>
      tpu.vector_store %arg5[%c0_25, %c0_26], %47 {strides = array<i32>} : memref<8x128xf32, #tpu.memory_space<vmem>>, vector<8x128xf32>,
    } else {
    }
    return
  }
  func.func @transform_0(%arg0: i32, %arg1: i32) -> (i32, i32) {
    %c1_i32 = arith.constant 1 : i32
    %0 = arith.muli %arg0, %c1_i32 : i32
    %1 = arith.addi %0, %arg1 : i32
    %c0_i32 = arith.constant 0 : i32
    %c0_i32_0 = arith.constant 0 : i32
    return %c0_i32, %1 : i32, i32
  }
  func.func @transform_1(%arg0: i32, %arg1: i32) -> (i32, i32) {
    %c1_i32 = arith.constant 1 : i32
    %0 = arith.muli %arg0, %c1_i32 : i32
    %1 = arith.addi %0, %arg1 : i32
    %c0_i32 = arith.constant 0 : i32
    %c0_i32_0 = arith.constant 0 : i32
    return %c0_i32, %1 : i32, i32
  }
  func.func @transform_2(%arg0: i32, %arg1: i32) -> (i32, i32) {
    %c0_i32 = arith.constant 0 : i32
    %c0_i32_0 = arith.constant 0 : i32
    return %arg0, %c0_i32 : i32, i32
  }
  func.func @transform_3(%arg0: i32, %arg1: i32) -> (i32, i32) {
    %c0_i32 = arith.constant 0 : i32
    %c0_i32_0 = arith.constant 0 : i32
    return %arg0, %c0_i32 : i32, i32
  }
}

</mosaic_0001>

<bundles_post_ra>
// kernel: cad_loss.3
= control target key start
LH: loop header
LB: loop body
LE: loop exit
PB: predicated region body
PF: predicated region fallthrough
CT: control target
= control target key end

     0   :  { %v61_v0 = vlaneseq  ;;  %v375_v4 = vmov 1966171168   ;;  %v376_v10 = vmov 0.0   ;;  %vm284_vm11 = vcmask 1040384   ;;  %s555_s0 = inlined_call_operand.vmem [shape: f32[40,256], index: 0, kind: input, shape index: {}]   ;;  %s556_s1 = inlined_call_operand.vmem [shape: s32[2,256], index: 1, kind: input, shape index: {}]   ;;  %s557_s2 = inlined_call_operand.vmem [shape: f32[8,128], index: 2, kind: output, shape index: {0}]   ;;  %s558_s3 = inlined_call_operand.vmem [shape: f32[8,128], index: 3, kind: output, shape index: {1}]  }
   0x1   :  { %v400_v1 = vld [vmem:[%s555_s0] sm:$0xff]  ;;  %v405_v2 = vld [vmem:[%s555_s0 + $0x8] sm:$0xff]  ;;  %v410_v3 = vld [vmem:[%s555_s0 + $0x10] sm:$0xff]  ;;  %v237_v5 = vunpack.c.l.s4 %v375_v4 }
   0x2   :  { %vm412_vm0 = vcmp.lt.s32.totalorder %v61_v0, 256  ;;  %v419_v7 = vld [vmem:[%s555_s0 + $0x18] sm:$0xff]  ;;  %v424_v8 = vld [vmem:[%s555_s0 + $0x20] sm:$0xff]  ;;  %v429_v9 = vld [vmem:[%s555_s0 + $0x28] sm:$0xff]  ;;  %v466_v20 = vshrl.u32 %v61_v0, 7 }
   0x3   :  { %65 = vst.msk [vmem:[#allocation2] sm:$0x3] %vm412_vm0, %v376_v10  ;;  %66 = vst.msk [vmem:[#allocation3] sm:$0x3] %vm412_vm0, %v376_v10  ;;  %v438_v11 = vld [vmem:[%s555_s0 + $0x30] sm:$0xff]  ;;  %v443_v12 = vld [vmem:[%s555_s0 + $0x38] sm:$0xff]  ;;  %v79_v14 = vmax.f32 %v400_v1, %v424_v8  ;;  %v89_v15 = vmax.f32 %v405_v2, %v429_v9  ;;  %v238_v24 = vunpack.c.0.s8 %v237_v5 }
   0x4   :  { %v448_v13 = vld [vmem:[%s555_s0 + $0x40] sm:$0xff]  ;;  %v457_v16 = vld [vmem:[%s555_s0 + $0x48] sm:$0xff]  ;;  %v80_v18 = vmax.f32 %v410_v3, %v438_v11  ;;  %v90_v19 = vmax.f32 %v419_v7, %v443_v12  ;;  %v473_v25 = vsub.s32 1, %v466_v20  ;;  %v227_v28 = vsub.s32 3, %v466_v20 }
   0x5   :  { %v77_v17 = vld [vmem:[%s556_s1] sm:$0xf]  ;;  %v81_v22 = vmax.f32 %v79_v14, %v448_v13  ;;  %v91_v23 = vmax.f32 %v89_v15, %v457_v16  ;;  %v482_v33 = vsub.s32 %v238_v24, %v466_v20  ;;  %v491_v48 = vsub.s32 0, %v466_v20 }
   0x6   :  { %v468_v21 = vcvt.s32.f32 %v77_v17  ;;  %v167_v55 = vsub.s32 2, %v466_v20 }
   0x7   :  { %v82_v26 = vmax.f32 %v81_v22, %v80_v18  ;;  %v92_v27 = vmax.f32 %v91_v23, %v90_v19  ;;  %v164_v0 = vrot.slane %v77_v17, %v491_v48  ;;  %v157_v19 = vadd.s32 8, %v466_v20 }
   0x8   :  { %v224_v29 = vrot.slane %v468_v21, %v473_v25  ;;  %v479_v32 = vrot.slane %v468_v21, %v227_v28  ;;  %v264_v36 = vrot.slane %v468_v21, %v482_v33  ;;  %v168_v10 = vrot.slane %v77_v17, %v167_v55 }
   0x9   :  { %v83_v30 = vrot.slane %v82_v26, 4  ;;  %v93_v31 = vrot.slane %v92_v27, 4  ;;  %v172_v22 = vrot.slane %v164_v0, %v491_v48  ;;  %v159_v28 = vadd.s32 24, %v466_v20 }
   0xa   :  { %v265_v41 = vcombine.high %v264_v36, %v264_v36  ;;  %v257_v42 = vld [vmem:[#allocation3] sm:$0x3]  ;;  %v176_v24 = vrot.slane %v168_v10, %v491_v48 }
   0xb   :  { %v84_v34 = vmax.f32 %v82_v26, %v83_v30  ;;  %v94_v35 = vmax.f32 %v92_v27, %v93_v31  ;;  %v158_v26 = vadd.s32 16, %v466_v20  ;;  %vm177_vm1 = vcmp.eq.s32.totalorder %v466_v20, %v172_v22 }
   0xc   :  { %v267_v47 = vadd.f32 %v265_v41, %v257_v42  ;;  %vm179_vm2 = vcmp.eq.s32.totalorder %v157_v19, %v172_v22  ;;  %vm178_vm3 = vcmp.eq.s32.totalorder %v466_v20, %v176_v24  ;;  %vm180_vm4 = vcmp.eq.s32.totalorder %v157_v19, %v176_v24 }
   0xd   :  { %v85_v37 = vrot.slane %v84_v34, 2  ;;  %v95_v38 = vrot.slane %v94_v35, 2  ;;  %v187_v17 = vsel %vm177_vm1, %v400_v1, 0.0  ;;  %v189_v27 = vsel %vm179_vm2, %v410_v3, 0.0 }
   0xe   :  { %268 = vst.msk [vmem:[#allocation3] sm:$0x3] %vm412_vm0, %v267_v47  ;;  %vm181_vm5 = vcmp.eq.s32.totalorder %v158_v26, %v172_v22  ;;  %v188_v30 = vsel %vm178_vm3, %v405_v2, 0.0  ;;  %v190_v31 = vsel %vm180_vm4, %v419_v7, 0.0  ;;  %vm182_vm6 = vcmp.eq.s32.totalorder %v158_v26, %v176_v24 }
   0xf   :  { %v86_v39 = vmax.f32 %v84_v34, %v85_v37  ;;  %v96_v40 = vmax.f32 %v94_v35, %v95_v38  ;;  %v197_v36 = vadd.f32 %v189_v27, %v187_v17  ;;  %v191_v38 = vsel %vm181_vm5, %v424_v8, 0.0 }
  0x10   :  { %vm183_vm7 = vcmp.eq.s32.totalorder %v159_v28, %v172_v22  ;;  %vm184_vm8 = vcmp.eq.s32.totalorder %v159_v28, %v176_v24 }
  0x11   :  { %v87_v43 = vrot.slane %v86_v39, 1  ;;  %v97_v44 = vrot.slane %v96_v40, 1 }
  0x13   :  { %v486_v45 = vmax.f32 %v86_v39, %v87_v43  ;;  %v488_v46 = vmax.f32 %v96_v40, %v97_v44  ;;  %v207_v39 = vadd.f32 %v190_v31, %v188_v30  ;;  %v198_v44 = vadd.f32 %v197_v36, %v191_v38 }
  0x15   :  { %v99_v49 = vsub.f32 %v400_v1, %v486_v45  ;;  %v100_v50 = vsub.f32 %v405_v2, %v488_v46  ;;  %v101_v51 = vsub.f32 %v410_v3, %v486_v45  ;;  %v102_v52 = vsub.f32 %v419_v7, %v488_v46 }
  0x16   :  { %v103_v53 = vsub.f32 %v424_v8, %v486_v45  ;;  %v104_v54 = vsub.f32 %v429_v9, %v488_v46  ;;  %v105_v56 = vsub.f32 %v438_v11, %v486_v45  ;;  %v106_v59 = vsub.f32 %v443_v12, %v488_v46 }
  0x17   :  { %v109_v57 = vmul.f32 1.442695, %v99_v49  ;;  %v111_v58 = vmul.f32 1.442695, %v100_v50  ;;  %v113_v60 = vmul.f32 1.442695, %v101_v51  ;;  %v107_v62 = vsub.f32 %v448_v13, %v486_v45 }
  0x18   :  { %v115_v61 = vmul.f32 1.442695, %v102_v52  ;;  %v117_v63 = vmul.f32 1.442695, %v103_v53  ;;  %v108_v4 = vsub.f32 %v457_v16, %v488_v46  ;;  %v119_v5 = vmul.f32 1.442695, %v104_v54 }
  0x19   :  { %351 = vpow2.f32 %v109_v57  ;;  %v121_v14 = vmul.f32 1.442695, %v105_v56  ;;  %v123_v15 = vmul.f32 1.442695, %v106_v59  ;;  %v125_v18 = vmul.f32 1.442695, %v107_v62 }
  0x1a   :  { %353 = vpow2.f32 %v111_v58  ;;  %v127_v23 = vmul.f32 1.442695, %v108_v4  ;;  %v160_v1 = vadd.s32 32, %v466_v20  ;;  %v192_v3 = vsel %vm182_vm6, %v429_v9, 0.0 }
  0x1b   :  { %355 = vpow2.f32 %v113_v60  ;;  %v193_v50 = vsel %vm183_vm7, %v438_v11, 0.0  ;;  %v208_v51 = vadd.f32 %v207_v39, %v192_v3  ;;  %v194_v53 = vsel %vm184_vm8, %v443_v12, 0.0 }
  0x1c   :  { %357 = vpow2.f32 %v115_v61  ;;  %vm185_vm9 = vcmp.eq.s32.totalorder %v160_v1, %v172_v22  ;;  %vm186_vm10 = vcmp.eq.s32.totalorder %v160_v1, %v176_v24  ;;  %v199_v56 = vadd.f32 %v198_v44, %v193_v50  ;;  %v219_v44 = vld [vmem:[#allocation2] sm:$0x3] }
  0x1d   :  { %359 = vpow2.f32 %v117_v63  ;;  %v195_v58 = vsel %vm185_vm9, %v448_v13, 0.0  ;;  %v209_v59 = vadd.f32 %v208_v51, %v194_v53  ;;  %v196_v61 = vsel %vm186_vm10, %v457_v16, 0.0 }
  0x1e   :  { %361 = vpow2.f32 %v119_v5  ;;  %v200_v63 = vadd.f32 %v199_v56, %v195_v58 }
  0x1f   :  { %363 = vpow2.f32 %v121_v14  ;;  %v210_v4 = vadd.f32 %v209_v59, %v196_v61 }
  0x20   :  { %365 = vpow2.f32 %v123_v15  ;;  %v201_v14 = vrot.slane %v200_v63, 4 }
  0x21   :  { %367 = vpow2.f32 %v125_v18  ;;  %v211_v18 = vrot.slane %v210_v4, 4 }
  0x22   :  { %369 = vpow2.f32 %v127_v23  ;;  %v202_v24 = vadd.f32 %v201_v14, %v200_v63 }
  0x23   :  { %v212_v26 = vadd.f32 %v211_v18, %v210_v4 }
  0x24   :  { %v203_v16 = vrot.slane %v202_v24, 2 }
  0x25   :  { %v213_v17 = vrot.slane %v212_v26, 2 }
  0x26   :  { %v352_v34 = vpop.eup %351  ;;  %v204_v27 = vadd.f32 %v203_v16, %v202_v24 }
  0x27   :  { %v354_v35 = vpop.eup %353  ;;  %v214_v28 = vadd.f32 %v213_v17, %v212_v26 }
  0x28   :  { %v356_v37 = vpop.eup %355  ;;  %v205_v30 = vrot.slane %v204_v27, 1 }
  0x29   :  { %v358_v40 = vpop.eup %357  ;;  %v129_v41 = vadd.f32 %v356_v37, %v352_v34  ;;  %v215_v31 = vrot.slane %v214_v28, 1 }
  0x2a   :  { %v360_v42 = vpop.eup %359  ;;  %v139_v43 = vadd.f32 %v358_v40, %v354_v35  ;;  %v206_v37 = vadd.f32 %v205_v30, %v204_v27 }
  0x2b   :  { %v362_v2 = vpop.eup %361  ;;  %v130_v7 = vadd.f32 %v360_v42, %v129_v41  ;;  %v216_v39 = vadd.f32 %v215_v31, %v214_v28 }
  0x2c   :  { %v364_v47 = vpop.eup %363  ;;  %v140_v49 = vadd.f32 %v362_v2, %v139_v43 }
  0x2d   :  { %v366_v8 = vpop.eup %365  ;;  %v131_v52 = vadd.f32 %v364_v47, %v130_v7 }
  0x2e   :  { %v368_v20 = vpop.eup %367  ;;  %v141_v54 = vadd.f32 %v366_v8, %v140_v49 }
  0x2f   :  { %v370_v9 = vpop.eup %369  ;;  %v132_v55 = vadd.f32 %v368_v20, %v131_v52 }
  0x30   :  { %v142_v57 = vadd.f32 %v370_v9, %v141_v54 }
  0x31   :  { %v133_v60 = vrot.slane %v132_v55, 4 }
  0x32   :  { %v143_v11 = vrot.slane %v142_v57, 4 }
  0x33   :  { %v134_v62 = vadd.f32 %v133_v60, %v132_v55 }
  0x34   :  { %v144_v0 = vadd.f32 %v143_v11, %v142_v57 }
  0x35   :  { %v135_v5 = vrot.slane %v134_v62, 2 }
  0x36   :  { %v145_v12 = vrot.slane %v144_v0, 2 }
  0x37   :  { %v136_v10 = vadd.f32 %v135_v5, %v134_v62 }
  0x38   :  { %v146_v15 = vadd.f32 %v145_v12, %v144_v0 }
  0x39   :  { %v137_v19 = vrot.slane %v136_v10, 1 }
  0x3a   :  { %v147_v22 = vrot.slane %v146_v15, 1 }
  0x3b   :  { %v138_v23 = vadd.f32 %v137_v19, %v136_v10 }
  0x3c   :  { %v148_v13 = vadd.f32 %v147_v22, %v146_v15 }
  0x3d   :  { %371 = vlog2.f32 %v138_v23 }
  0x3e   :  { %373 = vlog2.f32 %v148_v13 }
  0x4a   :  { %v372_v34 = vpop.eup %371 }
  0x4b   :  { %v374_v35 = vpop.eup %373  ;;  %v150_v36 = vmul.f32 0.6931472, %v372_v34 }
  0x4c   :  { %v152_v38 = vmul.f32 0.6931472, %v374_v35 }
  0x4d   :  { %v153_v40 = vadd.f32 %v150_v36, %v486_v45  ;;  %v297_v45 = vld [vmem:[#allocation3] sm:$0x3] }
  0x4e   :  { %v154_v41 = vadd.f32 %v152_v38, %v488_v46  ;;  %v302_v46 = vrot.slane %v297_v45, %v491_v48  ;;  %v306_v50 = vrot.slane %v297_v45, %v473_v25 }
  0x4f   :  { %v217_v1 = vsub.f32 %v153_v40, %v206_v37 }
  0x50   :  { %v218_v3 = vsub.f32 %v154_v41, %v216_v39  ;;  %v309_v52 = vsel %vm284_vm11, %v302_v46, 0.0  ;;  %v310_v53 = vsel %vm284_vm11, %v306_v50, 0.0 }
  0x51   :  { %v231_v42 = vmul.f32 %v224_v29, %v217_v1  ;;  %v311_v20 = vadd.f32 %v310_v53, %v309_v52 }
  0x52   :  { %v232_v43 = vmul.f32 %v479_v32, %v218_v3 }
  0x54   :  { %v235_v2 = vcombine.low %v231_v42, %v232_v43 }
  0x56   :  { %v242_v7 = vrot.slane %v235_v2, %v482_v33 }
  0x58   :  { %v249_v47 = vrot.slane %v242_v7, %v482_v33 }
  0x5a   :  { %v251_v49 = vadd.f32 %v249_v47, %v219_v44 }
  0x5c   :  { %256 = vst.msk [vmem:[#allocation2] sm:$0x3] %vm412_vm0, %v251_v49 }
  0x63   :  { %v272_v51 = vld [vmem:[#allocation2] sm:$0x3] }
  0x64   :  { %v277_v21 = vrot.slane %v272_v51, %v491_v48  ;;  %v281_v29 = vrot.slane %v272_v51, %v473_v25 }
  0x66   :  { %v285_v32 = vsel %vm284_vm11, %v277_v21, 0.0  ;;  %v286_v8 = vsel %vm284_vm11, %v281_v29, 0.0 }
  0x67   :  { %v287_v33 = vadd.f32 %v286_v8, %v285_v32 }
  0x69   :  { %288 = vadd.xlane.f32.xlu0 %v287_v33 }
  0x6d   :  { %312 = vadd.xlane.f32.xlu0 %v311_v20 }
  0xf2   :  { %v289_v6 = vpop.xlane.xlu0 %288 }
  0xf3   :  { %v290_v54 = vrot.slane %v289_v6, 4 }
  0xf5   :  { %v291_v9 = vadd.f32 %v290_v54, %v289_v6 }
  0xf6   :  { %v313_v55 = vpop.xlane.xlu0 %312 }
  0xf7   :  { %v292_v56 = vrot.slane %v291_v9, 2  ;;  %v314_v57 = vrot.slane %v313_v55, 4 }
  0xf9   :  { %v315_v58 = vadd.f32 %v314_v57, %v313_v55  ;;  %v293_v59 = vadd.f32 %v292_v56, %v291_v9 }
  0xfb   :  { %v316_v60 = vrot.slane %v315_v58, 2  ;;  %v294_v48 = vrot.slane %v293_v59, 1 }
  0xfd   :  { %v317_v61 = vadd.f32 %v316_v60, %v315_v58  ;;  %v295_v25 = vadd.f32 %v294_v48, %v293_v59 }
  0xff   :  { %345 = vpush %v295_v25  ;;  %v318_v11 = vrot.slane %v317_v61, 1 }
 0x101   :  { %v319_v62 = vadd.f32 %v318_v11, %v317_v61 }
 0x103   :  { %347 = vpush %v319_v62 }
 0x130   :  { %s346_s0 = spop %345 }
 0x131   :  { %v321_v63 = vstv %s346_s0 }
 0x132   :  { %322 = vst [vmem:[%s557_s2] sm:$0xff] %v321_v63 }
 0x134   :  { %s348_s8 = spop %347 }
 0x135   :  { %v323_v0 = vstv %s348_s8 }
 0x136   :  { %324 = vst [vmem:[%s558_s3] sm:$0xff] %v323_v0 }

// kernel: cad_loss.2
= control target key start
LH: loop header
LB: loop body
LE: loop exit
PB: predicated region body
PF: predicated region fallthrough
CT: control target
= control target key end

     0   :  { %v74_v0 = vlaneseq  ;;  %v190_v1 = vmov 0.0   ;;  %v191_v3 = vmov 1966171168   ;;  %vm134_vm1 = vcmask 1040384   ;;  %s224_s0 = inlined_call_operand.vmem [shape: f32[8,128], index: 0, kind: input, shape index: {}]   ;;  %s225_s1 = inlined_call_operand.vmem [shape: s32[2,128], index: 1, kind: input, shape index: {}]   ;;  %s226_s2 = inlined_call_operand.vmem [shape: f32[8,128], index: 2, kind: output, shape index: {0}]   ;;  %s227_s3 = inlined_call_operand.vmem [shape: f32[8,128], index: 3, kind: output, shape index: {1}]  }
   0x1   :  { %51 = vst [vmem:[#allocation2] sm:$0x1] %v190_v1  ;;  %v53_v2 = vld [vmem:[%s224_s0] sm:$0xff]  ;;  %v93_v4 = vunpack.c.l.s4 %v191_v3  ;;  %52 = vst [vmem:[#allocation3] sm:$0x1] %v190_v1 }
   0x2   :  { %v56_v5 = vrot.slane %v53_v2, 4  ;;  %v75_v6 = vshrl.u32 %v74_v0, 7  ;;  %v54_v8 = vld [vmem:[%s225_s1] sm:$0x3] }
   0x3   :  { %v94_v7 = vunpack.c.0.s8 %v93_v4  ;;  %v55_v10 = vcvt.s32.f32 %v54_v8 }
   0x4   :  { %v57_v9 = vmax.f32 %v53_v2, %v56_v5  ;;  %v78_v23 = vsub.s32 0, %v75_v6 }
   0x5   :  { %v97_v11 = vsub.s32 %v94_v7, %v75_v6 }
   0x6   :  { %v58_v12 = vrot.slane %v57_v9, 2  ;;  %v79_v24 = vrot.slane %v54_v8, %v78_v23 }
   0x7   :  { %v118_v13 = vrot.slane %v55_v10, %v97_v11 }
   0x8   :  { %v59_v14 = vmax.f32 %v57_v9, %v58_v12  ;;  %v110_v17 = vld [vmem:[#allocation3] sm:$0x1]  ;;  %vm80_vm0 = vcmp.eq.s32.totalorder %v75_v6, %v79_v24  ;;  %v89_v46 = vld [vmem:[#allocation2] sm:$0x1] }
   0x9   :  { %v119_v15 = vcombine.high %v118_v13, %v118_v13  ;;  %v81_v28 = vsel %vm80_vm0, %v53_v2, 0.0 }
   0xa   :  { %v60_v16 = vrot.slane %v59_v14, 1  ;;  %v82_v31 = vrot.slane %v81_v28, 4 }
   0xb   :  { %v126_v18 = vrot.slane %v119_v15, %v97_v11 }
   0xc   :  { %v61_v19 = vmax.f32 %v59_v14, %v60_v16  ;;  %v83_v34 = vadd.f32 %v82_v31, %v81_v28 }
   0xd   :  { %v128_v20 = vadd.f32 %v126_v18, %v110_v17 }
   0xe   :  { %v62_v21 = vsub.f32 %v53_v2, %v61_v19  ;;  %v84_v35 = vrot.slane %v83_v34, 2 }
   0xf   :  { %129 = vst [vmem:[#allocation3] sm:$0x1] %v128_v20 }
  0x10   :  { %v63_v22 = vmul.f32 1.442695, %v62_v21  ;;  %v85_v36 = vadd.f32 %v84_v35, %v83_v34 }
  0x12   :  { %186 = vpow2.f32 %v63_v22  ;;  %v86_v37 = vrot.slane %v85_v36, 1 }
  0x14   :  { %v87_v40 = vadd.f32 %v86_v37, %v85_v36 }
  0x16   :  { %v145_v50 = vld [vmem:[#allocation3] sm:$0x1] }
  0x17   :  { %v146_v52 = vsel %vm134_vm1, %v145_v50, 0.0 }
  0x1f   :  { %v187_v25 = vpop.eup %186 }
  0x20   :  { %v65_v26 = vrot.slane %v187_v25, 4 }
  0x22   :  { %v66_v27 = vadd.f32 %v187_v25, %v65_v26 }
  0x24   :  { %v67_v29 = vrot.slane %v66_v27, 2 }
  0x26   :  { %v68_v30 = vadd.f32 %v67_v29, %v66_v27 }
  0x28   :  { %v69_v32 = vrot.slane %v68_v30, 1 }
  0x2a   :  { %v70_v33 = vadd.f32 %v69_v32, %v68_v30 }
  0x2c   :  { %188 = vlog2.f32 %v70_v33 }
  0x39   :  { %v189_v38 = vpop.eup %188 }
  0x3a   :  { %v72_v39 = vmul.f32 0.6931472, %v189_v38 }
  0x3c   :  { %v73_v41 = vadd.f32 %v72_v39, %v61_v19 }
  0x3e   :  { %v88_v42 = vsub.f32 %v73_v41, %v87_v40 }
  0x40   :  { %v90_v43 = vmul.f32 %v88_v42, %v55_v10 }
  0x42   :  { %v98_v44 = vrot.slane %v90_v43, %v97_v11 }
  0x44   :  { %v99_v45 = vcombine.high %v98_v44, %v98_v44 }
  0x46   :  { %v106_v47 = vrot.slane %v99_v45, %v97_v11 }
  0x48   :  { %v108_v48 = vadd.f32 %v106_v47, %v89_v46 }
  0x4a   :  { %109 = vst [vmem:[#allocation2] sm:$0x1] %v108_v48 }
  0x51   :  { %v133_v49 = vld [vmem:[#allocation2] sm:$0x1] }
  0x52   :  { %v135_v51 = vsel %vm134_vm1, %v133_v49, 0.0 }
  0x53   :  { %136 = vadd.xlane.f32.xlu0 %v135_v51 }
  0x57   :  { %147 = vadd.xlane.f32.xlu0 %v146_v52 }
  0xdc   :  { %v137_v53 = vpop.xlane.xlu0 %136 }
  0xdd   :  { %v138_v54 = vrot.slane %v137_v53, 4 }
  0xdf   :  { %v139_v55 = vadd.f32 %v138_v54, %v137_v53 }
  0xe0   :  { %v148_v56 = vpop.xlane.xlu0 %147 }
  0xe1   :  { %v140_v57 = vrot.slane %v139_v55, 2  ;;  %v149_v58 = vrot.slane %v148_v56, 4 }
  0xe3   :  { %v150_v59 = vadd.f32 %v149_v58, %v148_v56  ;;  %v141_v60 = vadd.f32 %v140_v57, %v139_v55 }
  0xe5   :  { %v151_v61 = vrot.slane %v150_v59, 2  ;;  %v142_v62 = vrot.slane %v141_v60, 1 }
  0xe7   :  { %v152_v63 = vadd.f32 %v151_v61, %v150_v59  ;;  %v143_v0 = vadd.f32 %v142_v62, %v141_v60 }
  0xe9   :  { %180 = vpush %v143_v0  ;;  %v153_v1 = vrot.slane %v152_v63, 1 }
  0xeb   :  { %v154_v2 = vadd.f32 %v153_v1, %v152_v63 }
  0xed   :  { %182 = vpush %v154_v2 }
 0x11a   :  { %s181_s0 = spop %180 }
 0x11b   :  { %v156_v3 = vstv %s181_s0 }
 0x11c   :  { %157 = vst [vmem:[%s226_s2] sm:$0xff] %v156_v3 }
 0x11e   :  { %s183_s17 = spop %182 }
 0x11f   :  { %v158_v4 = vstv %s183_s17 }
 0x120   :  { %159 = vst [vmem:[%s227_s3] sm:$0xff] %v158_v4 }

</bundles_post_ra>
